<compile_context>
chip_gen: v7x
topology: tpu7x:2x2x1
jax: 0.10.0
libtpu: 0.0.40
codegen_flags: <defaults>
</compile_context>

<pallas_src>
import jax
import jax.numpy as jnp
from jax.experimental import pallas as pl
from jax.experimental.pallas import tpu as pltpu


def _round_up(x, m):
    return ((x + m - 1) // m) * m


def _mlp_kernel(x_ref, w1_ref, b1_ref, w2_ref, b2_ref, out_ref):
    # Layer 1: Linear on the MXU with f32 accumulation; bias + ReLU in f32 (VPU).
    h = jnp.dot(x_ref[...], w1_ref[...], preferred_element_type=jnp.float32)
    h = jnp.maximum(h + b1_ref[...], 0.0)
    # Layer 2: single output column -> VPU multiply by the broadcast W2 row and a
    # cross-lane reduction; avoids a 128x-padded MXU matmul for N == 1.
    out = jnp.sum(h * w2_ref[...], axis=-1, keepdims=True) + b2_ref[...]
    out_ref[...] = out.astype(out_ref.dtype)


def prepare_params(params, compute_dtype=jnp.bfloat16):
    """One-time parameter prep (do NOT redo per call).

    params: w1 (in, hidden), b1 (hidden,), w2 (hidden, 1), b2 (1,)
    Only the MXU operand W1 is cast to `compute_dtype`; everything touched by the
    VPU (biases, the W2 row) stays float32 (v5e has no bf16 VPU).
    """
    return {
        "w1": params["w1"].astype(compute_dtype),
        "b1": params["b1"].reshape(1, -1).astype(jnp.float32),
        "w2_row": params["w2"].reshape(1, -1).astype(jnp.float32),
        "b2": params["b2"].reshape(1, 1).astype(jnp.float32),
    }


def forward_network_one_hidden_layer(x, prepared, *, batch_tile=512,
                                     out_activation=None):
    """Fused one-hidden-layer MLP. `prepared` comes from prepare_params()."""
    B, input_dim = x.shape
    hidden_dim = prepared["w1"].shape[1]
    cdt = prepared["w1"].dtype
    itemsize = jnp.dtype(cdt).itemsize

    x_c = x.astype(cdt)  # no-op for f32 params; halves x HBM bytes for bf16

    # --- batch tile selection -------------------------------------------------
    tile = min(_round_up(batch_tile, 8), _round_up(B, 8))
    # Keep >= 2 "parallel" grid steps when the batch is big enough to split, so
    # both v7x TensorCores get fed (v5e/v6e have 1 TC, no effect there).
    if B >= 512 and pl.cdiv(B, tile) < 2:
        tile = _round_up(pl.cdiv(B, 2), 8)

    def _tile_vmem(t):
        return (2 * t * input_dim * itemsize   # x tile (double-buffered)
                + t * hidden_dim * 4           # f32 hidden intermediate
                + 2 * t * 4)                   # out tile (double-buffered)

    # Cap the tile so the per-step working set stays well inside VMEM
    # (v7x: 64 MiB physical / 32 MiB scoped default; v5e scoped default 16 MiB).
    while tile > 64 and _tile_vmem(tile) > 24 * 1024 * 1024:
        tile = _round_up(tile // 2, 8)

    grid = (pl.cdiv(B, tile),)  # last block may over-cover; OOB writes are masked

    weight_vmem = 2 * (input_dim * hidden_dim * itemsize + 2 * hidden_dim * 4 + 4)
    vmem_limit = int(min(max(2 * (_tile_vmem(tile) + weight_vmem), 16 << 20),
                         48 << 20))

    in_specs = [
        pl.BlockSpec((tile, input_dim), lambda i: (i, 0)),        # x (batch-tiled)
        pl.BlockSpec((input_dim, hidden_dim), lambda i: (0, 0)),  # W1 (grid-invariant)
        pl.BlockSpec((1, hidden_dim), lambda i: (0, 0)),          # b1
        pl.BlockSpec((1, hidden_dim), lambda i: (0, 0)),          # W2 row
        pl.BlockSpec((1, 1), lambda i: (0, 0)),                   # b2
    ]
    out_specs = pl.BlockSpec((tile, 1), lambda i: (i, 0))

    flops = 2 * B * input_dim * hidden_dim + 2 * B * hidden_dim
    bytes_accessed = (B * input_dim * itemsize
                      + input_dim * hidden_dim * itemsize
                      + (2 * hidden_dim + 1) * 4
                      + B * jnp.dtype(x.dtype).itemsize)
    cost = pl.CostEstimate(flops=flops, transcendentals=0,
                           bytes_accessed=bytes_accessed)

    out = pl.pallas_call(
        _mlp_kernel,
        out_shape=jax.ShapeDtypeStruct((B, 1), x.dtype),
        grid=grid,
        in_specs=in_specs,
        out_specs=out_specs,
        compiler_params=pltpu.CompilerParams(
            dimension_semantics=("parallel",),
            vmem_limit_bytes=vmem_limit),
        cost_estimate=cost,
    )(x_c, prepared["w1"], prepared["b1"], prepared["w2_row"], prepared["b2"])

    if out_activation is not None:
        out = out_activation(out)
    return out


def init_params(key, input_dim, hidden_dim1):
    """Deterministic PyTorch-nn.Linear-style init; weights stored as (in, out)."""
    dims = [(input_dim, hidden_dim1), (hidden_dim1, 1)]
    params = {}
    for i, (fan_in, fan_out) in enumerate(dims, start=1):
        key, kw, kb = jax.random.split(key, 3)
        bound = 1.0 / jnp.sqrt(fan_in)
        params[f"w{i}"] = jax.random.uniform(
            kw, (fan_in, fan_out), jnp.float32, -bound, bound)
        params[f"b{i}"] = jax.random.uniform(
            kb, (fan_out,), jnp.float32, -bound, bound)
    return params


def reference_forward(x, params, out_activation=None):
    """Pure-JAX reference matching the PyTorch module forward."""
    h = jnp.maximum(x @ params["w1"] + params["b1"], 0.0)
    out = h @ params["w2"] + params["b2"]
    return out_activation(out) if out_activation is not None else out


if __name__ == "__main__":
    # Small shapes consistent with the module: flat features in, scalar out.
    # batch=200 (not a tile multiple) exercises the ragged-last-block path.
    batch, input_dim, hidden_dim1 = 200, 64, 32

    key = jax.random.PRNGKey(0)
    key, kx = jax.random.split(key)
    x = jax.random.normal(kx, (batch, input_dim), jnp.float32)
    params = init_params(key, input_dim, hidden_dim1)
    y_ref = reference_forward(x, params)

    fwd = jax.jit(forward_network_one_hidden_layer)

    # Exact f32 path (tight tolerance).
    p_f32 = prepare_params(params, compute_dtype=jnp.float32)
    y_f32 = fwd(x, p_f32)
    jax.block_until_ready(y_f32)
    assert y_f32.shape == (batch, 1)
    assert jnp.allclose(y_f32, y_ref, atol=1e-5, rtol=1e-5)

    # Default bf16 inputs/weights (f32 MXU accumulation + f32 VPU math) — the
    # recommended production path; tolerance loosened for the input cast.
    p_bf16 = prepare_params(params)
    y_bf16 = fwd(x, p_bf16)
    jax.block_until_ready(y_bf16)
    assert y_bf16.shape == (batch, 1)
    assert jnp.allclose(y_bf16, y_ref, atol=2e-2, rtol=2e-2)

    print("KERNEL_OK")
</pallas_src>

<mosaic_0001>
module attributes {stable_mosaic.version = 11 : i64} {
  func.func @_mlp_kernel(%arg0: i32, %arg1: memref<200x64xf32, #tpu.memory_space<vmem>>, %arg2: memref<64x32xf32, #tpu.memory_space<vmem>>, %arg3: memref<1x32xf32, #tpu.memory_space<vmem>>, %arg4: memref<1x32xf32, #tpu.memory_space<vmem>>, %arg5: memref<1x1xf32, #tpu.memory_space<vmem>>, %arg6: memref<200x1xf32, #tpu.memory_space<vmem>>) attributes {dimension_semantics = [#tpu.dimension_semantics<parallel>], iteration_bounds = array<i64: 1>, scalar_prefetch = 0 : i64, scratch_operands = 0 : i64, tpu.core_type = #tpu.core_type<tc>, window_params = [{transform_indices = @transform_0, window_bounds = array<i64: 200, 64>}, {pipeline_mode = #tpu.pipeline_mode<synchronous>, transform_indices = @transform_1, window_bounds = array<i64: 64, 32>}, {pipeline_mode = #tpu.pipeline_mode<synchronous>, transform_indices = @transform_2, window_bounds = array<i64: 1, 32>}, {pipeline_mode = #tpu.pipeline_mode<synchronous>, transform_indices = @transform_3, window_bounds = array<i64: 1, 32>}, {pipeline_mode = #tpu.pipeline_mode<synchronous>, transform_indices = @transform_4, window_bounds = array<i64: 1, 1>}, {transform_indices = @transform_5, window_bounds = array<i64: 200, 1>}]} {
    %c0 = arith.constant 0 : index
    %c0_0 = arith.constant 0 : index
    %0 = vector.load %arg1[%c0, %c0_0] : memref<200x64xf32, #tpu.memory_space<vmem>>, vector<200x64xf32>
    %c0_1 = arith.constant 0 : index
    %c0_2 = arith.constant 0 : index
    %1 = vector.load %arg2[%c0_1, %c0_2] : memref<64x32xf32, #tpu.memory_space<vmem>>, vector<64x32xf32>
    %cst = arith.constant dense<0.000000e+00> : vector<200x32xf32>
    %2 = tpu.matmul %0, %1, %cst {dimension_numbers = #tpu.dot_dimension_numbers<[1], [0], [0], [1], [0, 0, 1, 1], [], []>} : vector<200x64xf32>, vector<64x32xf32>, vector<200x32xf32> -> vector<200x32xf32>
    %c0_3 = arith.constant 0 : index
    %c0_4 = arith.constant 0 : index
    %3 = vector.load %arg3[%c0_3, %c0_4] : memref<1x32xf32, #tpu.memory_space<vmem>>, vector<1x32xf32>
    %4 = vector.broadcast %3 : vector<1x32xf32> to vector<200x32xf32>
    %5 = arith.addf %2, %4 : vector<200x32xf32>
    %cst_5 = arith.constant 0.000000e+00 : f32
    %6 = vector.broadcast %cst_5 : f32 to vector<200x32xf32>
    %7 = arith.maximumf %5, %6 : vector<200x32xf32>
    %c0_6 = arith.constant 0 : index
    %c0_7 = arith.constant 0 : index
    %8 = vector.load %arg4[%c0_6, %c0_7] : memref<1x32xf32, #tpu.memory_space<vmem>>, vector<1x32xf32>
    %9 = vector.broadcast %8 : vector<1x32xf32> to vector<200x32xf32>
    %10 = arith.mulf %7, %9 : vector<200x32xf32>
    %cst_8 = arith.constant dense<0.000000e+00> : vector<200xf32>
    %11 = vector.multi_reduction <add>, %10, %cst_8 [1] : vector<200x32xf32> to vector<200xf32>
    %12 = vector.shape_cast %11 : vector<200xf32> to vector<200x1xf32>
    %c0_9 = arith.constant 0 : index
    %c0_10 = arith.constant 0 : index
    %13 = vector.load %arg5[%c0_9, %c0_10] : memref<1x1xf32, #tpu.memory_space<vmem>>, vector<1x1xf32>
    %14 = vector.broadcast %13 : vector<1x1xf32> to vector<200x1xf32>
    %15 = arith.addf %12, %14 : vector<200x1xf32>
    %c0_11 = arith.constant 0 : index
    %c0_12 = arith.constant 0 : index
    %16 = vector.load %arg6[%c0_11, %c0_12] : memref<200x1xf32, #tpu.memory_space<vmem>>, vector<200x1xf32>
    tpu.vector_store %arg6[%c0_11, %c0_12], %15 {strides = array<i32>} : memref<200x1xf32, #tpu.memory_space<vmem>>, vector<200x1xf32>,
    return
  }
  func.func @transform_0(%arg0: i32) -> (i32, i32) {
    %c0_i32 = arith.constant 0 : i32
    %c0_i32_0 = arith.constant 0 : i32
    return %arg0, %c0_i32 : i32, i32
  }
  func.func @transform_1(%arg0: i32) -> (i32, i32) {
    %c0_i32 = arith.constant 0 : i32
    %c0_i32_0 = arith.constant 0 : i32
    %c0_i32_1 = arith.constant 0 : i32
    return %c0_i32, %c0_i32_0 : i32, i32
  }
  func.func @transform_2(%arg0: i32) -> (i32, i32) {
    %c0_i32 = arith.constant 0 : i32
    %c0_i32_0 = arith.constant 0 : i32
    %c0_i32_1 = arith.constant 0 : i32
    return %c0_i32, %c0_i32_0 : i32, i32
  }
  func.func @transform_3(%arg0: i32) -> (i32, i32) {
    %c0_i32 = arith.constant 0 : i32
    %c0_i32_0 = arith.constant 0 : i32
    %c0_i32_1 = arith.constant 0 : i32
    return %c0_i32, %c0_i32_0 : i32, i32
  }
  func.func @transform_4(%arg0: i32) -> (i32, i32) {
    %c0_i32 = arith.constant 0 : i32
    %c0_i32_0 = arith.constant 0 : i32
    %c0_i32_1 = arith.constant 0 : i32
    return %c0_i32, %c0_i32_0 : i32, i32
  }
  func.func @transform_5(%arg0: i32) -> (i32, i32) {
    %c0_i32 = arith.constant 0 : i32
    %c0_i32_0 = arith.constant 0 : i32
    return %arg0, %c0_i32 : i32, i32
  }
}

</mosaic_0001>

<bundles_post_ra>
// kernel: forward_network_one_hidden_layer.1
= control target key start
LH: loop header
LB: loop body
LE: loop exit
PB: predicated region body
PF: predicated region fallthrough
CT: control target
= control target key end

     0   :  { %v698_v0 = vmov 0.0|0.0   ;;  %vm699_vm0 = vmmov 0   ;;  %v700_v6 = vmov 0.0   ;;  %vm62_vm1 = vcmask 523264   ;;  %s1120_s1 = inlined_call_operand.vmem [shape: f32[64,32], index: 1, kind: input, shape index: {}]   ;;  %s1121_s0 = inlined_call_operand.vmem [shape: f32[200,64], index: 0, kind: input, shape index: {}]   ;;  %s1122_s4 = inlined_call_operand.<no memory space> [shape: f32[1,1], index: 4, kind: input, shape index: {}]   ;;  %s1123_s2 = inlined_call_operand.vmem [shape: f32[1,32], index: 2, kind: input, shape index: {}]   ;;  %s1124_s3 = inlined_call_operand.vmem [shape: f32[1,32], index: 3, kind: input, shape index: {}]   ;;  %s1125_s5 = inlined_call_operand.vmem [shape: f32[200,1], index: 5, kind: output, shape index: {}]  }
   0x1   :  { %675 = vmatprep.subr.bf16.mxu0 %v698_v0  ;;  %687 = vmatprep.subr.bf16.mxu1 %v698_v0  ;;  %v47_v1 = vld [vmem:[%s1120_s1] sm:$0xff]  ;;  %v48_v2 = vld [vmem:[%s1120_s1 + $0x8] sm:$0xff]  ;;  %v49_v3 = vld [vmem:[%s1120_s1 + $0x10] sm:$0xff]  ;;  %v10_v39 = vstv %s1122_s4  ;;  %vm385_vm2 = vcmask 261120   ;;  %vm493_vm3 = vcmask 7168  }
   0x2   :  { %v676_v4 = vpack.c.bf16 %v48_v2, %v47_v1  ;;  %v50_v5 = vld [vmem:[%s1120_s1 + $0x18] sm:$0xff]  ;;  %600 = vmatprep.mubr.msk.f32.mxu0 %vm699_vm0, %v700_v6  ;;  %639 = vmatprep.mubr.msk.f32.mxu1 %vm699_vm0, %v700_v6  ;;  %v51_v8 = vld [vmem:[%s1120_s1 + $0x20] sm:$0xff]  ;;  %v52_v9 = vld [vmem:[%s1120_s1 + $0x28] sm:$0xff]  ;;  %11 = vst [vmem:[#allocation2] sm:$0x1] %v10_v39 }
   0x3   :  { %v679_v7 = vpack.c.bf16 %v50_v5, %v49_v3  ;;  %v682_v10 = vpack.c.bf16 %v52_v9, %v51_v8  ;;  %v53_v11 = vld [vmem:[%s1120_s1 + $0x30] sm:$0xff]  ;;  %v54_v12 = vld [vmem:[%s1120_s1 + $0x38] sm:$0xff]  ;;  %v22_v14 = vld [vmem:[%s1121_s0] sm:$0xff] }
   0x4   :  { %677 = vmatpush3.bf16.msra.mxu0 %v676_v4  ;;  %691 = vmatpush3.bf16.msra.mxu1 %v676_v4  ;;  %v685_v13 = vpack.c.bf16 %v54_v12, %v53_v11  ;;  %v35_v15 = vld [vmem:[%s1121_s0 + $0x68] sm:$0xff]  ;;  %v36_v17 = vld [vmem:[%s1121_s0 + $0x70] sm:$0xff]  ;;  %v37_v19 = vld [vmem:[%s1121_s0 + $0x78] sm:$0xff] }
   0x5   :  { %678 = vmatprep.subr.bf16.mxu0 %v698_v0  ;;  %688 = vmatprep.subr.bf16.mxu1 %v698_v0  ;;  %v23_v16 = vld [vmem:[%s1121_s0 + $0x8] sm:$0xff]  ;;  %v24_v18 = vld [vmem:[%s1121_s0 + $0x10] sm:$0xff]  ;;  %v25_v20 = vld [vmem:[%s1121_s0 + $0x18] sm:$0xff] }
   0x6   :  { %v38_v21 = vld [vmem:[%s1121_s0 + $0x80] sm:$0xff]  ;;  %v39_v23 = vld [vmem:[%s1121_s0 + $0x88] sm:$0xff]  ;;  %v40_v25 = vld [vmem:[%s1121_s0 + $0x90] sm:$0xff] }
   0x7   :  { %v26_v22 = vld [vmem:[%s1121_s0 + $0x20] sm:$0xff]  ;;  %v27_v24 = vld [vmem:[%s1121_s0 + $0x28] sm:$0xff]  ;;  %v28_v26 = vld [vmem:[%s1121_s0 + $0x30] sm:$0xff] }
   0x8   :  { %680 = vmatpush3.bf16.msra.mxu0 %v679_v7  ;;  %692 = vmatpush3.bf16.msra.mxu1 %v679_v7  ;;  %v41_v27 = vld [vmem:[%s1121_s0 + $0x98] sm:$0xff]  ;;  %v42_v29 = vld [vmem:[%s1121_s0 + $0xa0] sm:$0xff]  ;;  %v43_v31 = vld [vmem:[%s1121_s0 + $0xa8] sm:$0xff] }
   0x9   :  { %681 = vmatprep.subr.bf16.mxu0 %v698_v0  ;;  %689 = vmatprep.subr.bf16.mxu1 %v698_v0  ;;  %v29_v28 = vld [vmem:[%s1121_s0 + $0x38] sm:$0xff]  ;;  %v30_v30 = vld [vmem:[%s1121_s0 + $0x40] sm:$0xff]  ;;  %v31_v32 = vld [vmem:[%s1121_s0 + $0x48] sm:$0xff] }
   0xa   :  { %v44_v33 = vld [vmem:[%s1121_s0 + $0xb0] sm:$0xff]  ;;  %v45_v35 = vld [vmem:[%s1121_s0 + $0xb8] sm:$0xff]  ;;  %v46_v37 = vld [vmem:[%s1121_s0 + $0xc0] sm:$0xff] }
   0xb   :  { %v32_v34 = vld [vmem:[%s1121_s0 + $0x50] sm:$0xff]  ;;  %v33_v36 = vld [vmem:[%s1121_s0 + $0x58] sm:$0xff]  ;;  %v34_v38 = vld [vmem:[%s1121_s0 + $0x60] sm:$0xff] }
   0xc   :  { %683 = vmatpush3.bf16.msra.mxu0 %v682_v10  ;;  %693 = vmatpush3.bf16.msra.mxu1 %v682_v10  ;;  %v911_v40 = vld [vmem:[%s1123_s2] ss:$0 sm:$0xff] }
   0xd   :  { %684 = vmatprep.subr.bf16.mxu0 %v698_v0  ;;  %690 = vmatprep.subr.bf16.mxu1 %v698_v0  ;;  %v918_v47 = vld [vmem:[%s1124_s3] ss:$0 sm:$0xff] }
  0x10   :  { %686 = vmatpush3.bf16.msra.mxu0 %v685_v13  ;;  %694 = vmatpush3.bf16.msra.mxu1 %v685_v13 }
  0x13   :  { %601 = vmatmul.mubr.msk.f32.vlgmr.msra.gmra.mrb[0].mxu0 %vm62_vm1, %v22_v14  ;;  %640 = vmatmul.mubr.msk.f32.vlgmr.msra.gmra.mrb[0].mxu1 %vm62_vm1, %v35_v15 }
  0x14   :  { %603 = vmatprep.mubr.msk.f32.mxu0 %vm699_vm0, %v700_v6  ;;  %642 = vmatprep.mubr.msk.f32.mxu1 %vm699_vm0, %v700_v6 }
  0x17   :  { %604 = vmatmul.mubr.msk.f32.gmra.mrb[2].mxu0 %vm62_vm1, %v23_v16  ;;  %643 = vmatmul.mubr.msk.f32.gmra.mrb[2].mxu1 %vm62_vm1, %v36_v17 }
  0x18   :  { %606 = vmatprep.mubr.msk.f32.mxu0 %vm699_vm0, %v700_v6  ;;  %645 = vmatprep.mubr.msk.f32.mxu1 %vm699_vm0, %v700_v6 }
  0x1b   :  { %607 = vmatmul.mubr.msk.f32.gmra.mrb[4].mxu0 %vm62_vm1, %v24_v18  ;;  %646 = vmatmul.mubr.msk.f32.gmra.mrb[4].mxu1 %vm62_vm1, %v37_v19 }
  0x1c   :  { %609 = vmatprep.mubr.msk.f32.mxu0 %vm699_vm0, %v700_v6  ;;  %648 = vmatprep.mubr.msk.f32.mxu1 %vm699_vm0, %v700_v6 }
  0x1f   :  { %610 = vmatmul.mubr.msk.f32.gmra.mrb[6].mxu0 %vm62_vm1, %v25_v20  ;;  %649 = vmatmul.mubr.msk.f32.gmra.mrb[6].mxu1 %vm62_vm1, %v38_v21 }
  0x20   :  { %612 = vmatprep.mubr.msk.f32.mxu0 %vm699_vm0, %v700_v6  ;;  %651 = vmatprep.mubr.msk.f32.mxu1 %vm699_vm0, %v700_v6 }
  0x23   :  { %613 = vmatmul.mubr.msk.f32.gmra.mrb[8].mxu0 %vm62_vm1, %v26_v22  ;;  %652 = vmatmul.mubr.msk.f32.gmra.mrb[8].mxu1 %vm62_vm1, %v39_v23 }
  0x24   :  { %615 = vmatprep.mubr.msk.f32.mxu0 %vm699_vm0, %v700_v6  ;;  %654 = vmatprep.mubr.msk.f32.mxu1 %vm699_vm0, %v700_v6 }
  0x27   :  { %616 = vmatmul.mubr.msk.f32.gmra.mrb[10].mxu0 %vm62_vm1, %v27_v24  ;;  %655 = vmatmul.mubr.msk.f32.gmra.mrb[10].mxu1 %vm62_vm1, %v40_v25 }
  0x28   :  { %618 = vmatprep.mubr.msk.f32.mxu0 %vm699_vm0, %v700_v6  ;;  %657 = vmatprep.mubr.msk.f32.mxu1 %vm699_vm0, %v700_v6 }
  0x2b   :  { %619 = vmatmul.mubr.msk.f32.gmra.mrb[12].mxu0 %vm62_vm1, %v28_v26  ;;  %658 = vmatmul.mubr.msk.f32.gmra.mrb[12].mxu1 %vm62_vm1, %v41_v27 }
  0x2c   :  { %621 = vmatprep.mubr.msk.f32.mxu0 %vm699_vm0, %v700_v6  ;;  %660 = vmatprep.mubr.msk.f32.mxu1 %vm699_vm0, %v700_v6 }
  0x2f   :  { %622 = vmatmul.mubr.msk.f32.gmra.mrb[14].mxu0 %vm62_vm1, %v29_v28  ;;  %661 = vmatmul.mubr.msk.f32.gmra.mrb[14].mxu1 %vm62_vm1, %v42_v29 }
  0x30   :  { %624 = vmatprep.mubr.msk.f32.mxu0 %vm699_vm0, %v700_v6  ;;  %663 = vmatprep.mubr.msk.f32.mxu1 %vm699_vm0, %v700_v6 }
  0x33   :  { %625 = vmatmul.mubr.msk.f32.gmra.mrb[16].mxu0 %vm62_vm1, %v30_v30  ;;  %664 = vmatmul.mubr.msk.f32.gmra.mrb[16].mxu1 %vm62_vm1, %v43_v31 }
  0x34   :  { %627 = vmatprep.mubr.msk.f32.mxu0 %vm699_vm0, %v700_v6  ;;  %666 = vmatprep.mubr.msk.f32.mxu1 %vm699_vm0, %v700_v6 }
  0x37   :  { %628 = vmatmul.mubr.msk.f32.gmra.mrb[18].mxu0 %vm62_vm1, %v31_v32  ;;  %667 = vmatmul.mubr.msk.f32.gmra.mrb[18].mxu1 %vm62_vm1, %v44_v33 }
  0x38   :  { %630 = vmatprep.mubr.msk.f32.mxu0 %vm699_vm0, %v700_v6  ;;  %669 = vmatprep.mubr.msk.f32.mxu1 %vm699_vm0, %v700_v6 }
  0x3b   :  { %631 = vmatmul.mubr.msk.f32.gmra.mrb[20].mxu0 %vm62_vm1, %v32_v34  ;;  %670 = vmatmul.mubr.msk.f32.gmra.mrb[20].mxu1 %vm62_vm1, %v45_v35 }
  0x3c   :  { %633 = vmatprep.mubr.msk.f32.mxu0 %vm699_vm0, %v700_v6  ;;  %672 = vmatprep.mubr.msk.f32.mxu1 %vm699_vm0, %v700_v6 }
  0x3f   :  { %634 = vmatmul.mubr.msk.f32.gmra.mrb[22].mxu0 %vm62_vm1, %v33_v36  ;;  %673 = vmatmul.mubr.msk.f32.gmra.mrb[22].mxu1 %vm62_vm1, %v46_v37 }
  0x40   :  { %636 = vmatprep.mubr.msk.f32.mxu0 %vm699_vm0, %v700_v6 }
  0x43   :  { %637 = vmatmul.mubr.msk.f32.gmra.mrb[24].mxu0 %vm62_vm1, %v34_v38 }
  0xe6   :  { %v204_v41 = vpop.f32.mrb[0].mxu0  ;;  %v269_v42 = vpop.f32.mrb[0].mxu1 }
  0xe7   :  { %v205_v43 = vadd.f32 %v911_v40, %v204_v41  ;;  %v602_v44 = vpop.f32.mrb[1].mxu0  ;;  %v270_v45 = vadd.f32 %v911_v40, %v269_v42  ;;  %v641_v46 = vpop.f32.mrb[1].mxu1 }
  0xe9   :  { %v328_v48 = vmax.f32 %v205_v43, 0.0  ;;  %v341_v49 = vmax.f32 %v270_v45, 0.0 }
  0xea   :  { %v209_v50 = vpop.f32.mrb[2].mxu0  ;;  %v274_v51 = vpop.f32.mrb[2].mxu1 }
  0xeb   :  { %v210_v52 = vadd.f32 %v911_v40, %v209_v50  ;;  %v605_v53 = vpop.f32.mrb[3].mxu0  ;;  %v275_v54 = vadd.f32 %v911_v40, %v274_v51  ;;  %v644_v55 = vpop.f32.mrb[3].mxu1  ;;  %v360_v56 = vmul.f32 %v918_v47, %v328_v48  ;;  %v373_v57 = vmul.f32 %v918_v47, %v341_v49 }
  0xed   :  { %v329_v58 = vmax.f32 %v210_v52, 0.0  ;;  %v342_v59 = vmax.f32 %v275_v54, 0.0  ;;  %v386_v60 = vsel %vm385_vm2, %v360_v56, 0.0  ;;  %v425_v61 = vsel %vm385_vm2, %v373_v57, 0.0 }
  0xee   :  { %387 = vadd.xlane.f32.xlu0 %v386_v60  ;;  %v214_v62 = vpop.f32.mrb[4].mxu0  ;;  %v279_v63 = vpop.f32.mrb[4].mxu1  ;;  %426 = vadd.xlane.f32.xlu1 %v425_v61 }
  0xef   :  { %v215_v0 = vadd.f32 %v911_v40, %v214_v62  ;;  %v608_v1 = vpop.f32.mrb[5].mxu0  ;;  %v280_v2 = vadd.f32 %v911_v40, %v279_v63  ;;  %v647_v3 = vpop.f32.mrb[5].mxu1  ;;  %v361_v4 = vmul.f32 %v918_v47, %v329_v58  ;;  %v374_v5 = vmul.f32 %v918_v47, %v342_v59 }
  0xf1   :  { %v330_v6 = vmax.f32 %v215_v0, 0.0  ;;  %v343_v7 = vmax.f32 %v280_v2, 0.0  ;;  %v389_v8 = vsel %vm385_vm2, %v361_v4, 0.0  ;;  %v428_v11 = vsel %vm385_vm2, %v374_v5, 0.0 }
  0xf2   :  { %v284_v9 = vpop.f32.mrb[6].mxu1  ;;  %390 = vadd.xlane.f32.xlu0 %v389_v8  ;;  %v219_v10 = vpop.f32.mrb[6].mxu0 }
  0xf3   :  { %v285_v12 = vadd.f32 %v911_v40, %v284_v9  ;;  %v220_v13 = vadd.f32 %v911_v40, %v219_v10  ;;  %v611_v14 = vpop.f32.mrb[7].mxu0  ;;  %v650_v15 = vpop.f32.mrb[7].mxu1  ;;  %v362_v16 = vmul.f32 %v918_v47, %v330_v6  ;;  %v375_v17 = vmul.f32 %v918_v47, %v343_v7 }
  0xf5   :  { %v344_v18 = vmax.f32 %v285_v12, 0.0  ;;  %v331_v19 = vmax.f32 %v220_v13, 0.0  ;;  %v392_v20 = vsel %vm385_vm2, %v362_v16, 0.0  ;;  %v431_v28 = vsel %vm385_vm2, %v375_v17, 0.0 }
  0xf6   :  { %429 = vadd.xlane.f32.xlu0 %v428_v11  ;;  %393 = vadd.xlane.f32.xlu1 %v392_v20  ;;  %v224_v21 = vpop.f32.mrb[8].mxu0  ;;  %v289_v22 = vpop.f32.mrb[8].mxu1 }
  0xf7   :  { %v225_v23 = vadd.f32 %v911_v40, %v224_v21  ;;  %v614_v24 = vpop.f32.mrb[9].mxu0  ;;  %v290_v25 = vadd.f32 %v911_v40, %v289_v22  ;;  %v653_v26 = vpop.f32.mrb[9].mxu1  ;;  %v376_v27 = vmul.f32 %v918_v47, %v344_v18  ;;  %v363_v32 = vmul.f32 %v918_v47, %v331_v19 }
  0xf9   :  { %v332_v29 = vmax.f32 %v225_v23, 0.0  ;;  %v345_v30 = vmax.f32 %v290_v25, 0.0  ;;  %v434_v31 = vsel %vm385_vm2, %v376_v27, 0.0  ;;  %v395_v44 = vsel %vm385_vm2, %v363_v32, 0.0 }
  0xfa   :  { %v294_v33 = vpop.f32.mrb[10].mxu1  ;;  %435 = vadd.xlane.f32.xlu0 %v434_v31  ;;  %432 = vadd.xlane.f32.xlu1 %v431_v28  ;;  %v229_v34 = vpop.f32.mrb[10].mxu0 }
  0xfb   :  { %v295_v35 = vadd.f32 %v911_v40, %v294_v33  ;;  %v230_v36 = vadd.f32 %v911_v40, %v229_v34  ;;  %v617_v37 = vpop.f32.mrb[11].mxu0  ;;  %v656_v38 = vpop.f32.mrb[11].mxu1  ;;  %v364_v39 = vmul.f32 %v918_v47, %v332_v29  ;;  %v377_v41 = vmul.f32 %v918_v47, %v345_v30 }
  0xfd   :  { %v346_v42 = vmax.f32 %v295_v35, 0.0  ;;  %v333_v43 = vmax.f32 %v230_v36, 0.0  ;;  %v398_v45 = vsel %vm385_vm2, %v364_v39, 0.0  ;;  %v437_v53 = vsel %vm385_vm2, %v377_v41, 0.0 }
  0xfe   :  { %396 = vadd.xlane.f32.xlu1 %v395_v44  ;;  %399 = vadd.xlane.f32.xlu0 %v398_v45  ;;  %v234_v46 = vpop.f32.mrb[12].mxu0  ;;  %v299_v48 = vpop.f32.mrb[12].mxu1 }
  0xff   :  { %v235_v49 = vadd.f32 %v911_v40, %v234_v46  ;;  %v620_v50 = vpop.f32.mrb[13].mxu0  ;;  %v300_v51 = vadd.f32 %v911_v40, %v299_v48  ;;  %v659_v52 = vpop.f32.mrb[13].mxu1  ;;  %v378_v54 = vmul.f32 %v918_v47, %v346_v42  ;;  %v365_v58 = vmul.f32 %v918_v47, %v333_v43 }
 0x101   :  { %v334_v55 = vmax.f32 %v235_v49, 0.0  ;;  %v347_v56 = vmax.f32 %v300_v51, 0.0  ;;  %v440_v57 = vsel %vm385_vm2, %v378_v54, 0.0  ;;  %v401_v5 = vsel %vm385_vm2, %v365_v58, 0.0 }
 0x102   :  { %v304_v59 = vpop.f32.mrb[14].mxu1  ;;  %438 = vadd.xlane.f32.xlu1 %v437_v53  ;;  %441 = vadd.xlane.f32.xlu0 %v440_v57  ;;  %v239_v60 = vpop.f32.mrb[14].mxu0 }
 0x103   :  { %v305_v61 = vadd.f32 %v911_v40, %v304_v59  ;;  %v240_v62 = vadd.f32 %v911_v40, %v239_v60  ;;  %v623_v63 = vpop.f32.mrb[15].mxu0  ;;  %v662_v0 = vpop.f32.mrb[15].mxu1  ;;  %v366_v1 = vmul.f32 %v918_v47, %v334_v55  ;;  %v379_v2 = vmul.f32 %v918_v47, %v347_v56 }
 0x105   :  { %v348_v3 = vmax.f32 %v305_v61, 0.0  ;;  %v335_v4 = vmax.f32 %v240_v62, 0.0  ;;  %v404_v6 = vsel %vm385_vm2, %v366_v1, 0.0  ;;  %v443_v13 = vsel %vm385_vm2, %v379_v2, 0.0 }
 0x106   :  { %402 = vadd.xlane.f32.xlu1 %v401_v5  ;;  %405 = vadd.xlane.f32.xlu0 %v404_v6  ;;  %v244_v7 = vpop.f32.mrb[16].mxu0  ;;  %v309_v8 = vpop.f32.mrb[16].mxu1 }
 0x107   :  { %v245_v9 = vadd.f32 %v911_v40, %v244_v7  ;;  %v626_v10 = vpop.f32.mrb[17].mxu0  ;;  %v310_v11 = vadd.f32 %v911_v40, %v309_v8  ;;  %v665_v12 = vpop.f32.mrb[17].mxu1  ;;  %v380_v14 = vmul.f32 %v918_v47, %v348_v3  ;;  %v367_v18 = vmul.f32 %v918_v47, %v335_v4  ;;  %v993_v3 = vld [vmem:[#allocation2] ss:$0 sm:$0xff] }
 0x109   :  { %v336_v15 = vmax.f32 %v245_v9, 0.0  ;;  %v349_v16 = vmax.f32 %v310_v11, 0.0  ;;  %v446_v17 = vsel %vm385_vm2, %v380_v14, 0.0  ;;  %v407_v29 = vsel %vm385_vm2, %v367_v18, 0.0 }
 0x10a   :  { %v314_v19 = vpop.f32.mrb[18].mxu1  ;;  %444 = vadd.xlane.f32.xlu1 %v443_v13  ;;  %447 = vadd.xlane.f32.xlu0 %v446_v17  ;;  %v249_v20 = vpop.f32.mrb[18].mxu0 }
 0x10b   :  { %v315_v21 = vadd.f32 %v911_v40, %v314_v19  ;;  %v250_v22 = vadd.f32 %v911_v40, %v249_v20  ;;  %v629_v23 = vpop.f32.mrb[19].mxu0  ;;  %v668_v24 = vpop.f32.mrb[19].mxu1  ;;  %v368_v25 = vmul.f32 %v918_v47, %v336_v15  ;;  %v381_v26 = vmul.f32 %v918_v47, %v349_v16 }
 0x10d   :  { %v350_v27 = vmax.f32 %v315_v21, 0.0  ;;  %v337_v28 = vmax.f32 %v250_v22, 0.0  ;;  %v410_v30 = vsel %vm385_vm2, %v368_v25, 0.0  ;;  %v449_v35 = vsel %vm385_vm2, %v381_v26, 0.0 }
 0x10e   :  { %408 = vadd.xlane.f32.xlu1 %v407_v29  ;;  %411 = vadd.xlane.f32.xlu0 %v410_v30  ;;  %v254_v31 = vpop.f32.mrb[20].mxu0  ;;  %v319_v32 = vpop.f32.mrb[20].mxu1 }
 0x10f   :  { %v255_v33 = vadd.f32 %v911_v40, %v254_v31  ;;  %v632_v34 = vpop.f32.mrb[21].mxu0  ;;  %v382_v36 = vmul.f32 %v918_v47, %v350_v27  ;;  %v320_v37 = vadd.f32 %v911_v40, %v319_v32  ;;  %v671_v38 = vpop.f32.mrb[21].mxu1  ;;  %v369_v42 = vmul.f32 %v918_v47, %v337_v28 }
 0x111   :  { %v338_v39 = vmax.f32 %v255_v33, 0.0  ;;  %v452_v41 = vsel %vm385_vm2, %v382_v36, 0.0  ;;  %v351_v48 = vmax.f32 %v320_v37, 0.0  ;;  %v413_v53 = vsel %vm385_vm2, %v369_v42, 0.0 }
 0x112   :  { %450 = vadd.xlane.f32.xlu1 %v449_v35  ;;  %453 = vadd.xlane.f32.xlu0 %v452_v41  ;;  %v259_v43 = vpop.f32.mrb[22].mxu0  ;;  %v324_v44 = vpop.f32.mrb[22].mxu1 }
 0x113   :  { %v260_v45 = vadd.f32 %v911_v40, %v259_v43  ;;  %v635_v46 = vpop.f32.mrb[23].mxu0  ;;  %v370_v49 = vmul.f32 %v918_v47, %v338_v39  ;;  %v325_v50 = vadd.f32 %v911_v40, %v324_v44  ;;  %v674_v51 = vpop.f32.mrb[23].mxu1  ;;  %v383_v60 = vmul.f32 %v918_v47, %v351_v48 }
 0x115   :  { %v339_v52 = vmax.f32 %v260_v45, 0.0  ;;  %v416_v54 = vsel %vm385_vm2, %v370_v49, 0.0  ;;  %v352_v58 = vmax.f32 %v325_v50, 0.0  ;;  %v455_v63 = vsel %vm385_vm2, %v383_v60, 0.0 }
 0x116   :  { %414 = vadd.xlane.f32.xlu1 %v413_v53  ;;  %417 = vadd.xlane.f32.xlu0 %v416_v54  ;;  %v264_v55 = vpop.f32.mrb[24].mxu0 }
 0x117   :  { %v265_v56 = vadd.f32 %v911_v40, %v264_v55  ;;  %v638_v57 = vpop.f32.mrb[25].mxu0  ;;  %v371_v59 = vmul.f32 %v918_v47, %v339_v52  ;;  %v384_v1 = vmul.f32 %v918_v47, %v352_v58 }
 0x119   :  { %v340_v61 = vmax.f32 %v265_v56, 0.0  ;;  %v419_v62 = vsel %vm385_vm2, %v371_v59, 0.0  ;;  %v458_v40 = vsel %vm385_vm2, %v384_v1, 0.0 }
 0x11a   :  { %420 = vadd.xlane.f32.xlu1 %v419_v62 }
 0x11b   :  { %v372_v0 = vmul.f32 %v918_v47, %v340_v61 }
 0x11d   :  { %v422_v2 = vsel %vm385_vm2, %v372_v0, 0.0 }
 0x11e   :  { %456 = vadd.xlane.f32.xlu1 %v455_v63  ;;  %423 = vadd.xlane.f32.xlu0 %v422_v2 }
 0x122   :  { %459 = vadd.xlane.f32.xlu0 %v458_v40 }
 0x17b   :  { %v388_v4 = vpop.xlane.xlu0 %387  ;;  %v427_v5 = vpop.xlane.xlu1 %426 }
 0x17c   :  { %v468_v6 = vadd.f32 %v993_v3, %v388_v4  ;;  %v481_v7 = vadd.f32 %v993_v3, %v427_v5 }
 0x17e   :  { %494 = vst.msk [vmem:[%s1125_s5] sm:$0xff] %vm493_vm3, %v468_v6  ;;  %507 = vst.msk [vmem:[%s1125_s5 + $0x68] sm:$0xff] %vm493_vm3, %v481_v7 }
 0x17f   :  { %v391_v47 = vpop.xlane.xlu0 %390 }
 0x180   :  { %v469_v8 = vadd.f32 %v993_v3, %v391_v47 }
 0x182   :  { %495 = vst.msk [vmem:[%s1125_s5 + $0x8] sm:$0xff] %vm493_vm3, %v469_v8 }
 0x183   :  { %v430_v9 = vpop.xlane.xlu0 %429  ;;  %v394_v10 = vpop.xlane.xlu1 %393 }
 0x184   :  { %v482_v11 = vadd.f32 %v993_v3, %v430_v9  ;;  %v470_v12 = vadd.f32 %v993_v3, %v394_v10 }
 0x186   :  { %508 = vst.msk [vmem:[%s1125_s5 + $0x70] sm:$0xff] %vm493_vm3, %v482_v11  ;;  %496 = vst.msk [vmem:[%s1125_s5 + $0x10] sm:$0xff] %vm493_vm3, %v470_v12 }
 0x187   :  { %v436_v13 = vpop.xlane.xlu0 %435  ;;  %v433_v14 = vpop.xlane.xlu1 %432 }
 0x188   :  { %v484_v15 = vadd.f32 %v993_v3, %v436_v13  ;;  %v483_v16 = vadd.f32 %v993_v3, %v433_v14 }
 0x18a   :  { %510 = vst.msk [vmem:[%s1125_s5 + $0x80] sm:$0xff] %vm493_vm3, %v484_v15  ;;  %509 = vst.msk [vmem:[%s1125_s5 + $0x78] sm:$0xff] %vm493_vm3, %v483_v16 }
 0x18b   :  { %v397_v17 = vpop.xlane.xlu1 %396  ;;  %v400_v18 = vpop.xlane.xlu0 %399 }
 0x18c   :  { %v471_v19 = vadd.f32 %v993_v3, %v397_v17  ;;  %v472_v20 = vadd.f32 %v993_v3, %v400_v18 }
 0x18e   :  { %497 = vst.msk [vmem:[%s1125_s5 + $0x18] sm:$0xff] %vm493_vm3, %v471_v19  ;;  %498 = vst.msk [vmem:[%s1125_s5 + $0x20] sm:$0xff] %vm493_vm3, %v472_v20 }
 0x18f   :  { %v439_v21 = vpop.xlane.xlu1 %438  ;;  %v442_v22 = vpop.xlane.xlu0 %441 }
 0x190   :  { %v485_v23 = vadd.f32 %v993_v3, %v439_v21  ;;  %v486_v24 = vadd.f32 %v993_v3, %v442_v22 }
 0x192   :  { %511 = vst.msk [vmem:[%s1125_s5 + $0x88] sm:$0xff] %vm493_vm3, %v485_v23  ;;  %512 = vst.msk [vmem:[%s1125_s5 + $0x90] sm:$0xff] %vm493_vm3, %v486_v24 }
 0x193   :  { %v403_v25 = vpop.xlane.xlu1 %402  ;;  %v406_v26 = vpop.xlane.xlu0 %405 }
 0x194   :  { %v473_v27 = vadd.f32 %v993_v3, %v403_v25  ;;  %v474_v28 = vadd.f32 %v993_v3, %v406_v26 }
 0x196   :  { %499 = vst.msk [vmem:[%s1125_s5 + $0x28] sm:$0xff] %vm493_vm3, %v473_v27  ;;  %500 = vst.msk [vmem:[%s1125_s5 + $0x30] sm:$0xff] %vm493_vm3, %v474_v28 }
 0x197   :  { %v445_v29 = vpop.xlane.xlu1 %444  ;;  %v448_v30 = vpop.xlane.xlu0 %447 }
 0x198   :  { %v487_v31 = vadd.f32 %v993_v3, %v445_v29  ;;  %v488_v32 = vadd.f32 %v993_v3, %v448_v30 }
 0x19a   :  { %513 = vst.msk [vmem:[%s1125_s5 + $0x98] sm:$0xff] %vm493_vm3, %v487_v31  ;;  %514 = vst.msk [vmem:[%s1125_s5 + $0xa0] sm:$0xff] %vm493_vm3, %v488_v32 }
 0x19b   :  { %v409_v33 = vpop.xlane.xlu1 %408  ;;  %v412_v34 = vpop.xlane.xlu0 %411 }
 0x19c   :  { %v475_v35 = vadd.f32 %v993_v3, %v409_v33  ;;  %v476_v36 = vadd.f32 %v993_v3, %v412_v34 }
 0x19e   :  { %501 = vst.msk [vmem:[%s1125_s5 + $0x38] sm:$0xff] %vm493_vm3, %v475_v35  ;;  %502 = vst.msk [vmem:[%s1125_s5 + $0x40] sm:$0xff] %vm493_vm3, %v476_v36 }
 0x19f   :  { %v451_v37 = vpop.xlane.xlu1 %450  ;;  %v454_v38 = vpop.xlane.xlu0 %453 }
 0x1a0   :  { %v489_v39 = vadd.f32 %v993_v3, %v451_v37  ;;  %v490_v41 = vadd.f32 %v993_v3, %v454_v38 }
 0x1a2   :  { %515 = vst.msk [vmem:[%s1125_s5 + $0xa8] sm:$0xff] %vm493_vm3, %v489_v39  ;;  %516 = vst.msk [vmem:[%s1125_s5 + $0xb0] sm:$0xff] %vm493_vm3, %v490_v41 }
 0x1a3   :  { %v415_v42 = vpop.xlane.xlu1 %414  ;;  %v418_v43 = vpop.xlane.xlu0 %417 }
 0x1a4   :  { %v477_v44 = vadd.f32 %v993_v3, %v415_v42  ;;  %v478_v45 = vadd.f32 %v993_v3, %v418_v43 }
 0x1a6   :  { %503 = vst.msk [vmem:[%s1125_s5 + $0x48] sm:$0xff] %vm493_vm3, %v477_v44  ;;  %504 = vst.msk [vmem:[%s1125_s5 + $0x50] sm:$0xff] %vm493_vm3, %v478_v45 }
 0x1a7   :  { %v421_v46 = vpop.xlane.xlu1 %420 }
 0x1a8   :  { %v479_v48 = vadd.f32 %v993_v3, %v421_v46 }
 0x1aa   :  { %505 = vst.msk [vmem:[%s1125_s5 + $0x58] sm:$0xff] %vm493_vm3, %v479_v48 }
 0x1ab   :  { %v457_v49 = vpop.xlane.xlu1 %456  ;;  %v424_v50 = vpop.xlane.xlu0 %423 }
 0x1ac   :  { %v491_v51 = vadd.f32 %v993_v3, %v457_v49  ;;  %v480_v52 = vadd.f32 %v993_v3, %v424_v50 }
 0x1ae   :  { %517 = vst.msk [vmem:[%s1125_s5 + $0xb8] sm:$0xff] %vm493_vm3, %v491_v51  ;;  %506 = vst.msk [vmem:[%s1125_s5 + $0x60] sm:$0xff] %vm493_vm3, %v480_v52 }
 0x1af   :  { %v460_v53 = vpop.xlane.xlu0 %459 }
 0x1b0   :  { %v492_v54 = vadd.f32 %v993_v3, %v460_v53 }
 0x1b2   :  { %518 = vst.msk [vmem:[%s1125_s5 + $0xc0] sm:$0xff] %vm493_vm3, %v492_v54 }

</bundles_post_ra>
